<compile_context>
chip_gen: v6e
topology: v6e:2x2x1
jax: 0.10.0
libtpu: 0.0.40
codegen_flags: <defaults>
</compile_context>

<pallas_src>
import functools

import jax
import jax.numpy as jnp
from jax.experimental import pallas as pl
from jax.experimental.pallas import tpu as pltpu


def _msa_kernel(x_ref, wqkv_ref, bqkv_ref, o_ref, *, n_heads, mxu_dtype, approx_recip):
    # x_ref    : (B_TILE, S, d)   -- batch tile, all heads (lane-dense along d)
    # wqkv_ref : (d, 3*d)         -- block-diagonal fused [Wq | Wk | Wv], (in, out) layout
    # bqkv_ref : (1, 3*d)         -- fused [bq | bk | bv]
    # o_ref    : (B_TILE, S, d)
    B, S, d = x_ref.shape
    d_head = d // n_heads
    scale = 1.0 / (float(d_head) ** 0.5)

    # ---- Fused QKV for ALL heads: one (B*S, d) @ (d, 3*d) MXU matmul (bf16 in, f32 acc).
    x2 = x_ref[...].reshape(B * S, d).astype(mxu_dtype)
    qkv = jnp.dot(x2, wqkv_ref[...], preferred_element_type=jnp.float32)
    qkv = qkv + bqkv_ref[...]                                    # (B*S, 3d), f32
    qkv = qkv.reshape(B, S, 3 * d)

    # ---- Per-head attention.  H is small & static -> unrolled loop with per-head stores.
    # TODO(synk): for large n_heads convert to lax.fori_loop(unroll=small) / a grid axis to
    # bound live ranges, and for large S switch to flash-style KV tiling with online softmax
    # (mandatory under v7x's 64 MiB VMEM); for d < 128 in production, add the lane-dense
    # (N, S*d//128, 128) output packing trick.
    for h in range(n_heads):
        lo = h * d_head
        q_h = qkv[:, :, 0 * d + lo: 0 * d + lo + d_head]         # (B, S, d_head) f32
        k_h = qkv[:, :, 1 * d + lo: 1 * d + lo + d_head]
        v_h = qkv[:, :, 2 * d + lo: 2 * d + lo + d_head]

        # scores = q @ k^T (per batch element) without materializing a transpose.
        scores = jnp.einsum('bqd,bkd->bqk',
                            q_h.astype(mxu_dtype), k_h.astype(mxu_dtype),
                            preferred_element_type=jnp.float32) * scale   # (B, S, S) f32

        # Numerically-stable softmax; stats in f32.
        m = jnp.max(scores, axis=-1, keepdims=True)
        e = jnp.exp(scores - m)
        denom = jnp.sum(e, axis=-1, keepdims=True)
        if approx_recip:
            attn = e * pl.reciprocal(denom, approx=True)          # EUP slot (nearly free)
        else:
            attn = e / denom

        out_h = jnp.einsum('bqk,bkd->bqd',
                           attn.astype(mxu_dtype), v_h.astype(mxu_dtype),
                           preferred_element_type=jnp.float32)    # (B, S, d_head)

        # Per-head store straight into the output slab (no lane concatenate).
        o_ref[:, :, lo:lo + d_head] = out_h.astype(o_ref.dtype)


def _block_diag_t(w):
    """(H, d_head, d_head) in PyTorch (out, in) layout -> (d, d) block-diagonal (in, out)."""
    H, dh, _ = w.shape
    d = H * dh
    big = jnp.zeros((d, d), w.dtype)
    for h in range(H):
        big = big.at[h * dh:(h + 1) * dh, h * dh:(h + 1) * dh].set(w[h].T)
    return big


def _choose_batch_tile(N, per_batch_bytes, target_bytes=2 << 20):
    """Batch tile targeting ~2 MiB x tiles, divisible into N, keeping >=2 grid steps if possible."""
    bt = int(max(1, min(N, target_bytes // max(per_batch_bytes, 1))))
    while N % bt != 0:
        bt -= 1
    while bt > 1 and N // bt < 2:      # keep both v7x TensorCores busy / enable pipelining
        bt = max(1, bt // 2)
        while N % bt != 0:
            bt -= 1
    return bt


def my_msa(x, wq, bq, wk, bk, wv, bv, *,
           mxu_dtype=jnp.bfloat16, approx_reciprocal=True, batch_tile=None):
    """x: (N, S, d); w*: (H, d_head, d_head) PyTorch (out, in); b*: (H, d_head). Returns (N, S, d)."""
    N, S, d = x.shape
    H, d_head, _ = wq.shape
    assert d == H * d_head

    # Wrapper-side layout plumbing (tiny weight tensors, free relative to HBM passes):
    # block-diagonal per-head weights fused along the output axis -> (d, 3*d), cast to MXU dtype.
    wqkv = jnp.concatenate(
        [_block_diag_t(wq), _block_diag_t(wk), _block_diag_t(wv)], axis=-1
    ).astype(mxu_dtype)                                            # (d, 3d)
    bqkv = jnp.concatenate(
        [bq.reshape(-1), bk.reshape(-1), bv.reshape(-1)]
    ).reshape(1, 3 * d).astype(jnp.float32)                        # (1, 3d)

    itemsize = jnp.dtype(x.dtype).itemsize
    if batch_tile is None:
        batch_tile = _choose_batch_tile(N, S * d * itemsize)
    assert N % batch_tile == 0
    grid = (N // batch_tile,)

    kernel = functools.partial(_msa_kernel, n_heads=H, mxu_dtype=mxu_dtype,
                               approx_recip=approx_reciprocal)

    x_spec = pl.BlockSpec((batch_tile, S, d), lambda i: (i, 0, 0))
    w_spec = pl.BlockSpec((d, 3 * d), lambda i: (0, 0))            # constant -> DMA'd once
    b_spec = pl.BlockSpec((1, 3 * d), lambda i: (0, 0))            # constant -> DMA'd once
    o_spec = pl.BlockSpec((batch_tile, S, d), lambda i: (i, 0, 0))

    cost = pl.CostEstimate(
        flops=2 * N * S * d * 3 * d + 4 * N * H * S * S * d_head,
        transcendentals=N * H * S * S,
        bytes_accessed=(x.size * itemsize
                        + wqkv.size * jnp.dtype(mxu_dtype).itemsize
                        + bqkv.size * 4
                        + N * S * d * itemsize),
    )

    return pl.pallas_call(
        kernel,
        out_shape=jax.ShapeDtypeStruct((N, S, d), x.dtype),
        grid=grid,
        in_specs=[x_spec, w_spec, b_spec],
        out_specs=o_spec,
        compiler_params=pltpu.CompilerParams(dimension_semantics=("parallel",)),
        cost_estimate=cost,
    )(x, wqkv, bqkv)


def _reference_msa(x, wq, bq, wk, bk, wv, bv):
    """Plain-JAX (f32) reproduction of the PyTorch forward, for verification."""
    N, S, d = x.shape
    H, d_head, _ = wq.shape
    outs = []
    for b in range(N):
        heads = []
        for h in range(H):
            seq = x[b, :, h * d_head:(h + 1) * d_head]
            q = seq @ wq[h].T + bq[h]
            k = seq @ wk[h].T + bk[h]
            v = seq @ wv[h].T + bv[h]
            a = jax.nn.softmax(q @ k.T / (d_head ** 0.5), axis=-1)
            heads.append(a @ v)
        outs.append(jnp.concatenate(heads, axis=-1))
    return jnp.stack(outs, axis=0)


if __name__ == "__main__":
    # Small shapes consistent with the module: batch=2, seq=8, d=32, n_heads=2.
    N, S, d, H = 2, 8, 32, 2
    d_head = d // H

    key = jax.random.PRNGKey(0)
    kx, kwq, kbq, kwk, kbk, kwv, kbv = jax.random.split(key, 7)

    # Deterministic parameter init (PyTorch nn.Linear-style uniform bound 1/sqrt(in)).
    bound = 1.0 / (d_head ** 0.5)
    x = jax.random.normal(kx, (N, S, d), dtype=jnp.float32)
    wq = jax.random.uniform(kwq, (H, d_head, d_head), jnp.float32, -bound, bound)
    bq = jax.random.uniform(kbq, (H, d_head), jnp.float32, -bound, bound)
    wk = jax.random.uniform(kwk, (H, d_head, d_head), jnp.float32, -bound, bound)
    bk = jax.random.uniform(kbk, (H, d_head), jnp.float32, -bound, bound)
    wv = jax.random.uniform(kwv, (H, d_head, d_head), jnp.float32, -bound, bound)
    bv = jax.random.uniform(kbv, (H, d_head), jnp.float32, -bound, bound)

    out = my_msa(x, wq, bq, wk, bk, wv, bv)
    out = jax.block_until_ready(out)

    ref = _reference_msa(x, wq, bq, wk, bk, wv, bv)
    assert out.shape == (N, S, d), out.shape
    # bf16 MXU operands + approx EUP reciprocal -> relaxed tolerance vs. the f32 reference.
    err = jnp.max(jnp.abs(out - ref))
    assert jnp.allclose(out, ref, atol=3e-2, rtol=3e-2), f"mismatch vs reference, max abs err {err}"

    print("KERNEL_OK")
</pallas_src>

<mosaic_0001>
module attributes {stable_mosaic.version = 11 : i64} {
  func.func @_msa_kernel(%arg0: i32, %arg1: memref<1x8x32xf32, #tpu.memory_space<vmem>>, %arg2: memref<32x96xbf16, #tpu.memory_space<vmem>>, %arg3: memref<1x96xf32, #tpu.memory_space<vmem>>, %arg4: memref<1x8x32xf32, #tpu.memory_space<vmem>>) attributes {dimension_semantics = [#tpu.dimension_semantics<parallel>], iteration_bounds = array<i64: 2>, scalar_prefetch = 0 : i64, scratch_operands = 0 : i64, tpu.core_type = #tpu.core_type<tc>, window_params = [{transform_indices = @transform_0, window_bounds = array<i64: 1, 8, 32>}, {pipeline_mode = #tpu.pipeline_mode<synchronous>, transform_indices = @transform_1, window_bounds = array<i64: 32, 96>}, {pipeline_mode = #tpu.pipeline_mode<synchronous>, transform_indices = @transform_2, window_bounds = array<i64: 1, 96>}, {transform_indices = @transform_3, window_bounds = array<i64: 1, 8, 32>}]} {
    %c0 = arith.constant 0 : index
    %c0_0 = arith.constant 0 : index
    %c0_1 = arith.constant 0 : index
    %0 = vector.load %arg1[%c0, %c0_0, %c0_1] : memref<1x8x32xf32, #tpu.memory_space<vmem>>, vector<1x8x32xf32>
    %1 = vector.shape_cast %0 : vector<1x8x32xf32> to vector<8x32xf32>
    %2 = arith.truncf %1 : vector<8x32xf32> to vector<8x32xbf16>
    %c0_2 = arith.constant 0 : index
    %c0_3 = arith.constant 0 : index
    %3 = vector.load %arg2[%c0_2, %c0_3] : memref<32x96xbf16, #tpu.memory_space<vmem>>, vector<32x96xbf16>
    %cst = arith.constant dense<0.000000e+00> : vector<8x96xf32>
    %4 = tpu.matmul %2, %3, %cst {dimension_numbers = #tpu.dot_dimension_numbers<[1], [0], [0], [1], [0, 0, 1, 1], [], []>} : vector<8x32xbf16>, vector<32x96xbf16>, vector<8x96xf32> -> vector<8x96xf32>
    %c0_4 = arith.constant 0 : index
    %c0_5 = arith.constant 0 : index
    %5 = vector.load %arg3[%c0_4, %c0_5] : memref<1x96xf32, #tpu.memory_space<vmem>>, vector<1x96xf32>
    %6 = vector.broadcast %5 : vector<1x96xf32> to vector<8x96xf32>
    %7 = arith.addf %4, %6 : vector<8x96xf32>
    %8 = vector.shape_cast %7 : vector<8x96xf32> to vector<1x8x96xf32>
    %9 = vector.extract_strided_slice %8 {offsets = [0, 0, 0], sizes = [1, 8, 16], strides = [1, 1, 1]} : vector<1x8x96xf32> to vector<1x8x16xf32>
    %10 = vector.extract_strided_slice %8 {offsets = [0, 0, 32], sizes = [1, 8, 16], strides = [1, 1, 1]} : vector<1x8x96xf32> to vector<1x8x16xf32>
    %11 = vector.extract_strided_slice %8 {offsets = [0, 0, 64], sizes = [1, 8, 16], strides = [1, 1, 1]} : vector<1x8x96xf32> to vector<1x8x16xf32>
    %12 = arith.truncf %9 : vector<1x8x16xf32> to vector<1x8x16xbf16>
    %13 = arith.truncf %10 : vector<1x8x16xf32> to vector<1x8x16xbf16>
    "tpu.trace_start"() <{level = 10 : i32, message = "bqd,bkd->bqk"}> : () -> ()
    %cst_6 = arith.constant dense<0.000000e+00> : vector<1x8x8xf32>
    %14 = tpu.matmul %12, %13, %cst_6 {dimension_numbers = #tpu.dot_dimension_numbers<[2], [2], [1], [1], [0, 0, 0, 1, 1, 1], [0], [0]>} : vector<1x8x16xbf16>, vector<1x8x16xbf16>, vector<1x8x8xf32> -> vector<1x8x8xf32>
    "tpu.trace_stop"() : () -> ()
    %cst_7 = arith.constant 2.500000e-01 : f32
    %15 = vector.broadcast %cst_7 : f32 to vector<1x8x8xf32>
    %16 = arith.mulf %14, %15 : vector<1x8x8xf32>
    %cst_8 = arith.constant dense<0xFF800000> : vector<1x8xf32>
    %17 = vector.multi_reduction <maximumf>, %16, %cst_8 [2] : vector<1x8x8xf32> to vector<1x8xf32>
    %18 = vector.shape_cast %17 : vector<1x8xf32> to vector<1x8x1xf32>
    %19 = vector.broadcast %18 : vector<1x8x1xf32> to vector<1x8x8xf32>
    %20 = arith.subf %16, %19 : vector<1x8x8xf32>
    %21 = math.exp %20 : vector<1x8x8xf32>
    %cst_9 = arith.constant dense<0.000000e+00> : vector<1x8xf32>
    %22 = vector.multi_reduction <add>, %21, %cst_9 [2] : vector<1x8x8xf32> to vector<1x8xf32>
    %23 = vector.shape_cast %22 : vector<1x8xf32> to vector<1x8x1xf32>
    %24 = tpu.reciprocal %23 {approx = true} : vector<1x8x1xf32> -> vector<1x8x1xf32>
    %25 = vector.broadcast %24 : vector<1x8x1xf32> to vector<1x8x8xf32>
    %26 = arith.mulf %21, %25 : vector<1x8x8xf32>
    %27 = arith.truncf %26 : vector<1x8x8xf32> to vector<1x8x8xbf16>
    %28 = arith.truncf %11 : vector<1x8x16xf32> to vector<1x8x16xbf16>
    "tpu.trace_start"() <{level = 10 : i32, message = "bqk,bkd->bqd"}> : () -> ()
    %cst_10 = arith.constant dense<0.000000e+00> : vector<1x8x16xf32>
    %29 = tpu.matmul %27, %28, %cst_10 {dimension_numbers = #tpu.dot_dimension_numbers<[2], [1], [1], [2], [0, 0, 0, 1, 1, 2], [0], [0]>} : vector<1x8x8xbf16>, vector<1x8x16xbf16>, vector<1x8x16xf32> -> vector<1x8x16xf32>
    "tpu.trace_stop"() : () -> ()
    %c0_11 = arith.constant 0 : index
    %c0_12 = arith.constant 0 : index
    %c0_13 = arith.constant 0 : index
    %30 = vector.load %arg4[%c0_11, %c0_12, %c0_13] : memref<1x8x32xf32, #tpu.memory_space<vmem>>, vector<1x8x16xf32>
    tpu.vector_store %arg4[%c0_11, %c0_12, %c0_13], %29 {strides = array<i32>} : memref<1x8x32xf32, #tpu.memory_space<vmem>>, vector<1x8x16xf32>,
    %31 = vector.extract_strided_slice %8 {offsets = [0, 0, 16], sizes = [1, 8, 16], strides = [1, 1, 1]} : vector<1x8x96xf32> to vector<1x8x16xf32>
    %32 = vector.extract_strided_slice %8 {offsets = [0, 0, 48], sizes = [1, 8, 16], strides = [1, 1, 1]} : vector<1x8x96xf32> to vector<1x8x16xf32>
    %33 = vector.extract_strided_slice %8 {offsets = [0, 0, 80], sizes = [1, 8, 16], strides = [1, 1, 1]} : vector<1x8x96xf32> to vector<1x8x16xf32>
    %34 = arith.truncf %31 : vector<1x8x16xf32> to vector<1x8x16xbf16>
    %35 = arith.truncf %32 : vector<1x8x16xf32> to vector<1x8x16xbf16>
    "tpu.trace_start"() <{level = 10 : i32, message = "bqd,bkd->bqk"}> : () -> ()
    %cst_14 = arith.constant dense<0.000000e+00> : vector<1x8x8xf32>
    %36 = tpu.matmul %34, %35, %cst_14 {dimension_numbers = #tpu.dot_dimension_numbers<[2], [2], [1], [1], [0, 0, 0, 1, 1, 1], [0], [0]>} : vector<1x8x16xbf16>, vector<1x8x16xbf16>, vector<1x8x8xf32> -> vector<1x8x8xf32>
    "tpu.trace_stop"() : () -> ()
    %cst_15 = arith.constant 2.500000e-01 : f32
    %37 = vector.broadcast %cst_15 : f32 to vector<1x8x8xf32>
    %38 = arith.mulf %36, %37 : vector<1x8x8xf32>
    %cst_16 = arith.constant dense<0xFF800000> : vector<1x8xf32>
    %39 = vector.multi_reduction <maximumf>, %38, %cst_16 [2] : vector<1x8x8xf32> to vector<1x8xf32>
    %40 = vector.shape_cast %39 : vector<1x8xf32> to vector<1x8x1xf32>
    %41 = vector.broadcast %40 : vector<1x8x1xf32> to vector<1x8x8xf32>
    %42 = arith.subf %38, %41 : vector<1x8x8xf32>
    %43 = math.exp %42 : vector<1x8x8xf32>
    %cst_17 = arith.constant dense<0.000000e+00> : vector<1x8xf32>
    %44 = vector.multi_reduction <add>, %43, %cst_17 [2] : vector<1x8x8xf32> to vector<1x8xf32>
    %45 = vector.shape_cast %44 : vector<1x8xf32> to vector<1x8x1xf32>
    %46 = tpu.reciprocal %45 {approx = true} : vector<1x8x1xf32> -> vector<1x8x1xf32>
    %47 = vector.broadcast %46 : vector<1x8x1xf32> to vector<1x8x8xf32>
    %48 = arith.mulf %43, %47 : vector<1x8x8xf32>
    %49 = arith.truncf %48 : vector<1x8x8xf32> to vector<1x8x8xbf16>
    %50 = arith.truncf %33 : vector<1x8x16xf32> to vector<1x8x16xbf16>
    "tpu.trace_start"() <{level = 10 : i32, message = "bqk,bkd->bqd"}> : () -> ()
    %cst_18 = arith.constant dense<0.000000e+00> : vector<1x8x16xf32>
    %51 = tpu.matmul %49, %50, %cst_18 {dimension_numbers = #tpu.dot_dimension_numbers<[2], [1], [1], [2], [0, 0, 0, 1, 1, 2], [0], [0]>} : vector<1x8x8xbf16>, vector<1x8x16xbf16>, vector<1x8x16xf32> -> vector<1x8x16xf32>
    "tpu.trace_stop"() : () -> ()
    %c0_19 = arith.constant 0 : index
    %c0_20 = arith.constant 0 : index
    %c16 = arith.constant 16 : index
    %52 = vector.load %arg4[%c0_19, %c0_20, %c16] : memref<1x8x32xf32, #tpu.memory_space<vmem>>, vector<1x8x16xf32>
    tpu.vector_store %arg4[%c0_19, %c0_20, %c16], %51 {strides = array<i32>} : memref<1x8x32xf32, #tpu.memory_space<vmem>>, vector<1x8x16xf32>,
    return
  }
  func.func @transform_0(%arg0: i32) -> (i32, i32, i32) {
    %c0_i32 = arith.constant 0 : i32
    %c0_i32_0 = arith.constant 0 : i32
    %c0_i32_1 = arith.constant 0 : i32
    return %arg0, %c0_i32, %c0_i32_0 : i32, i32, i32
  }
  func.func @transform_1(%arg0: i32) -> (i32, i32) {
    %c0_i32 = arith.constant 0 : i32
    %c0_i32_0 = arith.constant 0 : i32
    %c0_i32_1 = arith.constant 0 : i32
    return %c0_i32, %c0_i32_0 : i32, i32
  }
  func.func @transform_2(%arg0: i32) -> (i32, i32) {
    %c0_i32 = arith.constant 0 : i32
    %c0_i32_0 = arith.constant 0 : i32
    %c0_i32_1 = arith.constant 0 : i32
    return %c0_i32, %c0_i32_0 : i32, i32
  }
  func.func @transform_3(%arg0: i32) -> (i32, i32, i32) {
    %c0_i32 = arith.constant 0 : i32
    %c0_i32_0 = arith.constant 0 : i32
    %c0_i32_1 = arith.constant 0 : i32
    return %arg0, %c0_i32, %c0_i32_0 : i32, i32, i32
  }
}

</mosaic_0001>

<bundles_post_ra>
// kernel: tpu_custom_call.1
= control target key start
LH: loop header
LB: loop body
LE: loop exit
PB: predicated region body
PF: predicated region fallthrough
CT: control target
= control target key end

     0   :  { %8 = vsyncpa [#allocation3], 0  ;;  %s1090_s0 = inlined_call_operand.hbm [shape: f32[2,8,32], index: 0, kind: input, shape index: {}]   ;;  %s1091_s1 = inlined_call_operand.hbm [shape: bf16[32,96], index: 1, kind: input, shape index: {}]   ;;  %s1092_s2 = inlined_call_operand.vmem [shape: f32[1,96], index: 2, kind: input, shape index: {}]   ;;  %s1093_s3 = inlined_call_operand.hbm [shape: f32[2,8,32], index: 3, kind: output, shape index: {}]  }
   0x1   :  { %10 = vsyncpa [#allocation3 + $0x1], 0 }
   0x2   :  { %11 = vsyncpa [#allocation6], 0 }
   0x3   :  { %12 = vsyncpa [#allocation4], 0 }
   0x4   :  { %14 = vsyncpa [#allocation4 + $0x1], 0  ;;  %s896_s12 = smov 0   ;;  %s898_s13 = smov 0  }
   0x5   :  { %s900_s14 = smov 0   ;;  %s902_s15 = smov 0  }
   0x6 LB: > { %s917_s16 = sadd.s32 4294967295, %s861_s15   ;;  %s597_s17 = sadd.s32 4294967294, %s861_s15   ;;  %s861_s15 = sphi %s902_s15, %s1115_s15   ;;  %s857_s14 = sphi %s900_s14, %s1114_s14   ;;  %s853_s13 = sphi %s898_s13, %s1113_s13   ;;  %s849_s12 = sphi %s896_s12, %s1112_s12  }
   0x7   : > { %p40_p0 = scmp.ne.s32.totalorder %s853_s13, %s849_s12  ;;  %p1094_p1 = scmp.eq.s32.totalorder %s917_s16, 0 }
   0x8   : > { %p112_p3 = scmp.eq.s32.totalorder %s597_s17, 1  ;;  %p598_p5 = scmp.ge.s32.totalorder %s861_s15, 1 }
   0x9   : > { %p926_p4 = por %p1094_p1, %p40_p0  ;;  %p119_p7 = scmp.lt.s32.totalorder %s861_s15, 3 }
   0xa   : > { %p931_p6 = por %p112_p3, %p40_p0  ;;  %s863_s21 = smov [#allocation5]  }
   0xb   : > { %s1098_s18 = scalar_select %p926_p4, 1, 0 }
   0xc   : > { %s1099_s19 = scalar_select %p931_p6, 1, 0 }
   0xd   : > { %p936_p8 = pnand %p598_p5, %p119_p7  ;;  %s131_s22 = sshll.u32 %s863_s21, 4  ;;  %s132_s22 = int_to_ptr.vmem [resolvable:$true] %s131_s22 }
   0xe   : > { %s950_s24 = sadd.s32 1, %s861_s15   ;;  %s27_s25 = sadd.s32 1, %s857_s14 }
   0xf   : > { %s1100_s20 = scalar_select %p936_p8, 1, 0 }
  0x10   : > { %p670_p9 = pneg %p936_p8  ;;  %s24_s26 = ssub.s32 %s861_s15, %s950_s24 }
  0x11   : > { %s750_s27 = scalar_lea.vmem %s132_s22, 256  ;;  %p758_p5 = scmp.lt.s32.totalorder %s132_s22, %s132_s22 }
  0x12   : > { %p945_p11 = pnand %p670_p9, %p1094_p1  ;;  %p751_p13 = scmp.ne.s32.totalorder %s132_s22, %s750_s27 }
  0x13   : > { %p759_p7 = scmp.lt.s32.totalorder %s750_s27, %s750_s27 }
  0x14   : > { %p741_p12 = pneg %p945_p11 }
  0x15   : > { %p760_p10 = por %p759_p7, %p758_p5 }
  0x16   : > { %p753_p0 = pnand %p751_p13, %p741_p12 }
  0x18   : > { %p754_p3 = pneg %p753_p0 }
  0x1a   : > { %p761_p2 = pnand %p760_p10, %p754_p3 }
  0x1c   : > { %764 = shalt.err (!%p761_p2)
}
  0x1d   : > { %s864_s28 = smov 64   ;;  %s865_s29 = smov 4  }
  0x1e   : > { %673 = dma.hbm_to_vmem [thread:$0]  (!%p945_p11), %s1091_s1, 256, %s132_s22, [#allocation6], %s864_s28, %s864_s28, %s865_s29  }
  0x1f   : > { %p25_p9 = scmp.eq.s32.totalorder %s24_s26, 0  ;;  %p34_p12 = scmp.ne.s32.totalorder %s857_s14, %s853_s13 }
  0x20   : > { %p35_p10 = scmp.eq.s32.totalorder %s861_s15, 0  ;;  %p683_p2 = scmp.lt.s32.totalorder %s861_s15, 2 }
  0x21   : > { %s967_s5 = scalar_select %p25_p9, %s857_s14, %s27_s25  }
  0x22   : > { %p36_p13 = por %p35_p10, %p34_p12  ;;  %p1102_p0 = scmp.eq.s32.totalorder %s917_s16, 1 }
  0x23   : > { %s148_s7 = sand.u32 1, %s857_s14   ;;  %s602_s8 = sshll.u32 %s861_s15, 7 }
  0x24   : > { %p971_p3 = por %p1102_p0, %p34_p12  ;;  %s601_s9 = sshll.u32 %s148_s7, 3 }
  0x25   : > { %s980_s17 = scalar_lea.hbm %s1090_s0, %s602_s8  ;;  %s152_s21 = scalar_lea.vmem [#allocation2], %s601_s9 }
  0x26   : > { %s1103_s6 = scalar_select %p971_p3, 1, 0 }
  0x27   : > { %s159_s22 = sshll.u32 %s152_s21, 4  ;;  %p982_p11 = pnand %p683_p2, %p36_p13  ;;  %s160_s22 = int_to_ptr.vmem [resolvable:$true] %s159_s22 }
  0x28   : > { %s149_s25 = scalar_lea.sflag [#allocation3], %s148_s7  ;;  %s765_s26 = scalar_lea.hbm %s980_s17, 128 }
  0x29   : > { %p766_p5 = scmp.ne.s32.totalorder %s980_s17, %s765_s26  ;;  %p767_p7 = pneg %p982_p11 }
  0x2a   : > { %s770_s29 = scalar_lea.hbm %s1090_s0, 256  ;;  %p771_p10 = scmp.lt.s32.totalorder %s980_s17, %s1090_s0 }
  0x2b   : > { %p768_p9 = pnand %p767_p7, %p766_p5  ;;  %p772_p2 = scmp.lt.s32.totalorder %s770_s29, %s765_s26 }
  0x2d   : > { %p769_p12 = pneg %p768_p9  ;;  %p773_p13 = por %p772_p2, %p771_p10 }
  0x2f   : > { %p774_p0 = pnand %p773_p13, %p769_p12 }
  0x31   : > { %777 = shalt.err (!%p774_p0)
}
  0x32   : > { %s778_s8 = scalar_lea.vmem %s160_s22, 128  ;;  %s866_s7 = smov [#allocation2]  }
  0x33   : > { %p779_p1 = scmp.ne.s32.totalorder %s160_s22, %s778_s8  ;;  %s783_s9 = sshll.u32 %s866_s7, 4  ;;  %s784_s9 = int_to_ptr.vmem [resolvable:$false] %s783_s9 }
  0x34   : > { %s785_s10 = scalar_lea.vmem %s784_s9, 256  ;;  %p786_p5 = scmp.lt.s32.totalorder %s160_s22, %s784_s9 }
  0x35   : > { %p781_p6 = pnand %p779_p1, %p767_p7  ;;  %p787_p9 = scmp.lt.s32.totalorder %s785_s10, %s778_s8 }
  0x37   : > { %p782_p3 = pneg %p781_p6  ;;  %p788_p4 = por %p787_p9, %p786_p5 }
  0x39   : > { %p789_p8 = pnand %p788_p4, %p782_p3 }
  0x3b   : > { %792 = shalt.err (!%p789_p8)
}
  0x3c   : > { %677 = dma.hbm_to_vmem [thread:$0]  (!%p982_p11), %s980_s17, 128, %s160_s22, %s149_s25  }
  0x3d   : > { %p1105_p12 = scmp.ne.s32.totalorder %s1100_s20, 0 }
  0x3e   : > { %s1003_s11 = sand.u32 (!%p1105_p12), 1, %s853_s13   ;;  %p1106_p1 = scmp.ne.s32.totalorder (!%p1105_p12), %s1098_s18, 0 }
  0x3f   : > { %168 = sbr.rel (%p1105_p12) target bundleno = 1240 (0x4d8), region = 32  ;;  %s604_s21 = sshll.u32 (!%p1105_p12), %s1003_s11, 3 }
  0x40   : > { %s171_s26 = scalar_lea.sflag (!%p1105_p12), [#allocation3], %s1003_s11  ;;  %s174_s27 = scalar_lea.vmem (!%p1105_p12), [#allocation2], %s604_s21 }
  0x44   : > { %836 = dma.done.wait (%p1106_p1), %s171_s26, 128  }
  0x45   : > { %838 = vsyncadd (%p1106_p1), %s171_s26, 4294967168  ;;  %p1107_p4 = scmp.eq.s32.totalorder %s917_s16, 0 }
  0x47   : > { %840 = dma.done.wait (%p1107_p4), [#allocation6], 256   ;;  %p1108_p6 = pmov %p1107_p4 }
  0x48   : > { %v867_v0 = vmov 0.0   ;;  %vm868_vm0 = vmmov 0   ;;  %v729_v1 = vld [vmem:[#allocation5 + $0x8] sm:$0xff]   ;;  %v730_v2 = vld [vmem:[#allocation5] sm:$0xff]   ;;  %v202_v3 = vld [vmem:[%s174_s27] sm:$0xff]  ;;  %vm227_vm1 = vcmask 261120  }
  0x49   : > { %842 = vsyncadd (%p1108_p6), [#allocation6], 4294967040  ;;  %630 = vmatprep.subr.bf16.mxu0 %v867_v0  ;;  %634 = vmatprep.mubr.msk.bf16.mxu0 %vm868_vm0, %v867_v0  ;;  %v203_v4 = vpack.c.bf16 %v202_v3, %v202_v3  ;;  %v607_v5 = vld [vmem:[%s1092_s2] ss:$0 sm:$0xff]  ;;  %s869_s17 = smov 112   ;;  %s870_s22 = smov 96  }
  0x4a   : > { %638 = vmatprep.subr.bf16.mxu1 %v867_v0  ;;  %640 = vmatprep.mubr.msk.bf16.mxu1 %vm868_vm0, %v867_v0  ;;  %s871_s23 = smov 80   ;;  %vm275_vm2 = vcmask 130048   ;;  %vm323_vm3 = vcmask 64512   ;;  %s872_s25 = smov 64   ;;  %vm341_vm4 = vcmask 1043456   ;;  %vm501_vm5 = vcmask 261248  }
  0x4b   : > { %631 = vmatpush3.bf16.msra.mxu0 %v729_v1  ;;  %s873_s28 = smov 48   ;;  %s200_s29 = scalar_lea.vmem [#allocation7], %s604_s21 }
  0x4c   : > { %632 = vmatprep.subr.bf16.mxu0 %v867_v0  ;;  %s874_s30 = smov 16   ;;  %s616_s4 = sshll.u32 %s917_s16, 7 }
  0x4d   : > { %s517_s8 = sshll.u32 %s200_s29, 4  ;;  %s1053_s10 = scalar_lea.hbm %s1093_s3, %s616_s4  ;;  %s518_s8 = int_to_ptr.vmem [resolvable:$true] %s517_s8 }
  0x4e   : > { %s504_s21 = scalar_lea.sflag [#allocation4], %s1003_s11  ;;  %s793_s26 = scalar_lea.vmem %s518_s8, 128 }
  0x4f   : > { %633 = vmatpush3.bf16.msra.mxu0 %v730_v2  ;;  %p794_p8 = scmp.ne.s32.totalorder %s518_s8, %s793_s26  ;;  %p1109_p3 = scmp.ne.s32.totalorder %s1103_s6, 0 }
  0x50   : > { %644 = vmatprep.subr.bf16.mxu0 %v867_v0  ;;  %s875_s27 = smov [#allocation7]  }
  0x51   : > { %p795_p11 = pnand %p794_p8, %p1109_p3  ;;  %s797_s18 = sshll.u32 %s875_s27, 4  ;;  %s798_s18 = int_to_ptr.vmem [resolvable:$false] %s797_s18 }
  0x52   : > { %635 = vmatmul.mubr.msk.bf16.vlgmr.msra.gmra.mxu0 %vm227_vm1, %v203_v4  ;;  %s799_s16 = scalar_lea.vmem %s798_s18, 256  ;;  %p800_p10 = scmp.lt.s32.totalorder %s518_s8, %s798_s18 }
  0x53   : > { %646 = vmatprep.mubr.msk.bf16.mxu0 %vm868_vm0, %v867_v0  ;;  %p796_p7 = pneg %p795_p11  ;;  %p801_p2 = scmp.lt.s32.totalorder %s799_s16, %s793_s26 }
  0x55   : > { %p802_p13 = por %p801_p2, %p800_p10 }
  0x57   : > { %p803_p0 = pnand %p802_p13, %p796_p7 }
 0x112   : > { %v265_v6 = vpop.f32.mrf.mxu0 }
 0x113   : > { %v266_v7 = vadd.f32 %v607_v5, %v265_v6 }
 0x114   : > { %v636_v8 = vpop.f32.mrf.mxu0 }
 0x115   : > { %v271_v9 = vpack.c.bf16 %v266_v7, %v266_v7 }
 0x116   : > { %v268_v10 = vpop.f32.mrf.mxu0 }
 0x117   : > { %386 = vrot.lane.b32.xlu1 %v271_v9, %s869_s17  ;;  %273 = vrot.lane.b32.xlu0 %v271_v9, %s870_s22 }
 0x118   : > { %v637_v11 = vpop.f32.mrf.mxu0 }
 0x11b   : > { %388 = vrot.lane.b32.xlu0 %v271_v9, %s871_s23 }
 0x189   : > { %v274_v12 = vpop.permute.xlu0 %273  ;;  %v387_v16 = vpop.permute.xlu1 %386 }
 0x18a   : > { %v280_v13 = vsel %vm275_vm2, %v274_v12, 0 }
 0x18b   : > { %639 = vmatpush3.bf16.xpose.msra.mxu1 %v280_v13 }
 0x18c   : > { %650 = vmatprep.subr.bf16.mxu1 %v867_v0 }
 0x18d   : > { %v389_v14 = vpop.permute.xlu0 %388 }
 0x18e   : > { %v394_v15 = vsel %vm275_vm2, %v389_v14, 0 }
 0x192   : > { %641 = vmatmul.mubr.msk.bf16.vlgmr.msra.gmra.mxu1 %vm275_vm2, %v271_v9 }
 0x193   : > { %651 = vmatpush3.bf16.xpose.msra.mxu1 %v394_v15  ;;  %652 = vmatprep.mubr.msk.bf16.mxu1 %vm868_vm0, %v867_v0 }
 0x19a   : > { %653 = vmatmul.mubr.msk.bf16.vlgmr.msra.gmra.mxu1 %vm275_vm2, %v387_v16 }
 0x252   : > { %v316_v17 = vpop.f32.mrf.mxu1 }
 0x253   : > { %v322_v18 = vmul.f32 0.25, %v316_v17 }
 0x254   : > { %v642_v19 = vpop.f32.mrf.mxu1 }
 0x255   : > { %v324_v20 = vsel %vm323_vm3, %v322_v18, -inf }
 0x256   : > { %325 = vmax.xlane.f32.xlu1 %v324_v20  ;;  %v319_v21 = vpop.f32.mrf.mxu1 }
 0x258   : > { %v643_v22 = vpop.f32.mrf.mxu1 }
 0x25a   : > { %v430_v23 = vpop.f32.mrf.mxu1 }
 0x25b   : > { %v436_v24 = vmul.f32 0.25, %v430_v23 }
 0x25c   : > { %v654_v25 = vpop.f32.mrf.mxu1 }
 0x25d   : > { %v437_v26 = vsel %vm323_vm3, %v436_v24, -inf }
 0x25e   : > { %438 = vmax.xlane.f32.xlu0 %v437_v26  ;;  %v433_v27 = vpop.f32.mrf.mxu1 }
 0x260   : > { %v655_v28 = vpop.f32.mrf.mxu1 }
 0x2df   : > { %v326_v29 = vpop.xlane.xlu1 %325 }
 0x2e0   : > { %v327_v30 = vsub.f32 %v322_v18, %v326_v29 }
 0x2e2   : > { %v328_v31 = vmul.f32 1.442695, %v327_v30 }
 0x2e4   : > { %731 = vpow2.f32 %v328_v31 }
 0x2e7   : > { %v439_v32 = vpop.xlane.xlu0 %438 }
 0x2e8   : > { %v440_v33 = vsub.f32 %v436_v24, %v439_v32 }
 0x2ea   : > { %v441_v34 = vmul.f32 1.442695, %v440_v33 }
 0x2ec   : > { %733 = vpow2.f32 %v441_v34 }
 0x2f1   : > { %v732_v35 = vpop.eup %731 }
 0x2f2   : > { %v330_v36 = vsel %vm323_vm3, %v732_v35, 0.0 }
 0x2f3   : > { %331 = vadd.xlane.f32.xlu0 %v330_v36 }
 0x2f9   : > { %v734_v37 = vpop.eup %733 }
 0x2fa   : > { %v443_v38 = vsel %vm323_vm3, %v734_v37, 0.0 }
 0x2fb   : > { %444 = vadd.xlane.f32.xlu1 %v443_v38 }
 0x309   : > { %336 = vrot.lane.b32.xlu0 %v271_v9, %s872_s25 }
 0x30c   : > { %449 = vrot.lane.b32.xlu1 %v271_v9, %s873_s28 }
 0x37c   : > { %v332_v39 = vpop.xlane.xlu0 %331 }
 0x37d   : > { %735 = vrcp.f32 %v332_v39 }
 0x380   : > { %v337_v40 = vpop.permute.xlu0 %336 }
 0x381   : > { %v343_v41 = vsel %vm341_vm4, %v337_v40, 0 }
 0x382   : > { %645 = vmatpush3.bf16.msra.mxu0 %v343_v41 }
 0x383   : > { %656 = vmatprep.subr.bf16.mxu0 %v867_v0 }
 0x384   : > { %v445_v42 = vpop.xlane.xlu1 %444 }
 0x385   : > { %737 = vrcp.f32 %v445_v42 }
 0x388   : > { %v450_v45 = vpop.permute.xlu1 %449 }
 0x389   : > { %v455_v47 = vsel %vm341_vm4, %v450_v45, 0 }
 0x38a   : > { %v736_v43 = vpop.eup %735 }
 0x38b   : > { %v334_v44 = vmul.f32 %v736_v43, %v732_v35 }
 0x38d   : > { %v335_v46 = vpack.c.bf16 %v334_v44, %v334_v44 }
 0x38f   : > { %647 = vmatmul.mubr.msk.bf16.vlgmr.msra.gmra.mxu0 %vm323_vm3, %v335_v46 }
 0x390   : > { %657 = vmatpush3.bf16.msra.mxu0 %v455_v47  ;;  %658 = vmatprep.mubr.msk.bf16.mxu0 %vm868_vm0, %v867_v0 }
 0x392   : > { %v738_v48 = vpop.eup %737 }
 0x393   : > { %v447_v49 = vmul.f32 %v738_v48, %v734_v37 }
 0x395   : > { %v448_v50 = vpack.c.bf16 %v447_v49, %v447_v49 }
 0x397   : > { %659 = vmatmul.mubr.msk.bf16.vlgmr.msra.gmra.mxu0 %vm323_vm3, %v448_v50 }
 0x44f   : > { %v379_v51 = vpop.f32.mrf.mxu0 }
 0x450   : > { %385 = vst.msk [vmem:[%s200_s29] sm:$0xff] %vm275_vm2, %v379_v51 }
 0x451   : > { %v648_v52 = vpop.f32.mrf.mxu0 }
 0x453   : > { %v382_v53 = vpop.f32.mrf.mxu0 }
 0x455   : > { %v649_v54 = vpop.f32.mrf.mxu0 }
 0x457   : > { %v491_v55 = vpop.f32.mrf.mxu0 }
 0x458   : > { %498 = vrot.lane.b32.xlu1 %v491_v55, %s874_s30 }
 0x459   : > { %v660_v56 = vpop.f32.mrf.mxu0 }
 0x45b   : > { %v494_v57 = vpop.f32.mrf.mxu0 }
 0x45d   : > { %v661_v58 = vpop.f32.mrf.mxu0 }
 0x4ca   : > { %v499_v59 = vpop.permute.xlu1 %498 }
 0x4cb   : > { %502 = vst.msk [vmem:[%s200_s29] sm:$0xff] %vm501_vm5, %v499_v59 }
 0x4cc   : > { %806 = shalt.err (!%p803_p0)
}
 0x4cd   : > { %s807_s20 = scalar_lea.hbm %s1053_s10, 128  ;;  %s811_s22 = scalar_lea.hbm %s1093_s3, 256 }
 0x4ce   : > { %p808_p5 = scmp.ne.s32.totalorder %s1053_s10, %s807_s20  ;;  %p812_p1 = scmp.lt.s32.totalorder %s1053_s10, %s1093_s3 }
 0x4cf   : > { %p813_p4 = scmp.lt.s32.totalorder %s811_s22, %s807_s20 }
 0x4d0   : > { %p809_p9 = pnand %p808_p5, %p1109_p3 }
 0x4d1   : > { %p814_p6 = por %p813_p4, %p812_p1 }
 0x4d2   : > { %p810_p12 = pneg %p809_p9 }
 0x4d4   : > { %p815_p8 = pnand %p814_p6, %p810_p12 }
 0x4d6   : > { %818 = shalt.err (!%p815_p8)
}
 0x4d7   : > { %668 = dma.vmem_to_hbm [thread:$0]  (%p1109_p3), %s518_s8, 128, %s1053_s10, %s504_s21  }
 0x4d8 PF: > { %s529_s28 = sand.u32 1, %s849_s12   ;;  %p1110_p11 = scmp.ne.s32.totalorder %s1099_s19, 0 }
 0x4d9   : > { %p1111_p7 = scmp.ge.s32.totalorder %s861_s15, 2  ;;  %s530_s29 = scalar_lea.sflag [#allocation4], %s529_s28 }
 0x4db   : > { %p679_p10 = pnand %p1111_p7, %p1110_p11 }
 0x4dd   : > { %p680_p2 = pneg %p679_p10 }
 0x4df   : > { %844 = dma.done.wait (%p680_p2), %s530_s29, 128  }
 0x4e0   : > { %846 = vsyncadd (%p680_p2), %s530_s29, 4294967168  ;;  %p17_p13 = scmp.ge.s32.totalorder %s950_s24, 4   ;;  %s1112_s12 = smov %s853_s13 }
 0x4e1   : > { %s1113_s13 = smov %s857_s14  ;;  %s1114_s14 = smov %s967_s5 }
 0x4e2   : > { %s1115_s15 = smov %s950_s24  ;;  %19 = sbr.rel (!%p17_p13) target bundleno = 6 (0x6), region = 81 }
 0x4e7   :  { %535 = vsyncpa [#allocation3], 1 }
 0x4e8   :  { %537 = vsyncpa [#allocation3 + $0x1], 1 }
 0x4e9   :  { %538 = vsyncpa [#allocation6], 1 }
 0x4ea   :  { %539 = vsyncpa [#allocation4], 1 }
 0x4eb   :  { %541 = vsyncpa [#allocation4 + $0x1], 1 }

</bundles_post_ra>
